<compile_context>
chip_gen: v7x
topology: tpu7x:2x2x1
jax: 0.10.0
libtpu: 0.0.40
codegen_flags: <defaults>
</compile_context>

<pallas_src>
import functools

import jax
import jax.numpy as jnp
from jax import lax
from jax.experimental import pallas as pl
from jax.experimental.pallas import tpu as pltpu

_LANE = 128


def _finalize(s, ss, w_ref, b_ref, o_ref, hw_true):
    """mean/var -> rsqrt scale -> 1x1 conv (BN folded) -> hsigmoid."""
    n = jnp.float32(hw_true)
    mean = s / n                                           # AdaptiveAvgPool2d(1)
    # TODO(synk): single-pass (sumsq - s*mean)/(n-1) can lose precision vs the
    # two-pass torch.var when |mean| >> std; switch to a shifted accumulation
    # if bit-tight parity is ever required.
    var = (ss - s * mean) / (n - 1.0)                      # unbiased variance
    y = mean * lax.rsqrt(var + jnp.float32(1e-3))
    z = jnp.dot(y, w_ref[...], preferred_element_type=jnp.float32) + b_ref[...]
    # Hsigmoid: relu6(z + 3) / 6
    o_ref[...] = (jnp.clip(z + 3.0, 0.0, 6.0) *
                  jnp.float32(1.0 / 6.0)).astype(o_ref.dtype)


def _single_pass_kernel(x_ref, w_ref, b_ref, o_ref, *, hw_true):
    """Whole spatial extent in one block (small feature maps): no scratch
    accumulators, no init/finalize branching.  Block last dim == full hw, so
    no masking is needed either."""
    x = x_ref[...].astype(jnp.float32)                     # (b_tile, c, hw)
    s = jnp.sum(x, axis=-1)
    ss = jnp.sum(x * x, axis=-1)
    _finalize(s, ss, w_ref, b_ref, o_ref, hw_true)


def _streaming_kernel(x_ref, w_ref, b_ref, o_ref, sum_ref, sumsq_ref, *,
                      hw_true, hw_tile, n_chunks, unroll):
    """Streams hw in lane-aligned tiles.

    x_ref:     (b_tile, c, hw_tile)   one spatial tile of the input
    w_ref:     (c, k)                 1x1-conv weight with BN scale folded in
    b_ref:     (1, k)                 folded BN bias
    o_ref:     (b_tile, k)            output block (written on last hw step)
    sum_ref:   (b_tile, c, 128) f32   lane-preserving running sum(x)
    sumsq_ref: (b_tile, c, 128) f32   lane-preserving running sum(x*x)

    The ragged hw tail (no host-side pad) is zero-masked before accumulation
    on the last grid step only; the cross-lane reduce + matmul + hsigmoid run
    once per batch block, off the streaming critical path.
    """
    j = pl.program_id(1)
    last = pl.num_programs(1) - 1

    @pl.when(j == 0)
    def _init():
        sum_ref[...] = jnp.zeros_like(sum_ref)
        sumsq_ref[...] = jnp.zeros_like(sumsq_ref)

    def _accumulate(mask_tail):
        # fori_loop over 128-lane chunks: bounds vreg live ranges (no full-tile
        # f32 temporary) and gives the LLO scheduler a visible loop.
        def body(m, carry):
            s, ss = carry
            off = pl.multiple_of(m * _LANE, _LANE)
            v = x_ref[:, :, pl.ds(off, _LANE)].astype(jnp.float32)
            if mask_tail:
                lane = lax.broadcasted_iota(jnp.int32, v.shape, 2)
                gidx = j * hw_tile + off + lane
                v = jnp.where(gidx < hw_true, v, 0.0)      # garbage lanes -> 0
            return s + v, ss + v * v
        zero = jnp.zeros(sum_ref.shape, jnp.float32)
        return lax.fori_loop(0, n_chunks, body, (zero, zero), unroll=unroll)

    @pl.when(j != last)
    def _steady():
        s, ss = _accumulate(False)
        sum_ref[...] += s
        sumsq_ref[...] += ss

    @pl.when(j == last)
    def _tail_and_finalize():
        s, ss = _accumulate(True)
        s = jnp.sum(sum_ref[...] + s, axis=-1)      # single XLU reduce here
        ss = jnp.sum(sumsq_ref[...] + ss, axis=-1)  # (b_tile, c)
        _finalize(s, ss, w_ref, b_ref, o_ref, hw_true)


def _round_down(x, m):
    return (x // m) * m


def attention_weights(x_nchw, conv_w, bn_gamma, bn_beta, bn_rmean, bn_rvar,
                      *, b_tile=None, hw_tile=None):
    """x_nchw: (b, c, h, w) f32/bf16 ; conv_w: (k, c) ; bn params: (k,) -> (b, k)."""
    b, c, h, w = x_nchw.shape
    k = conv_w.shape[0]
    hw = h * w
    if hw < 2:
        # torch.var(..., unbiased) over a 1x1 spatial map divides by zero;
        # keep the original module's precondition explicit.
        raise ValueError("AttentionWeights requires h*w >= 2 (unbiased variance)")

    # Fold BatchNorm2d(k, eps=2e-5) (eval mode) into an effective weight + bias.
    scale = (bn_gamma.astype(jnp.float32) *
             lax.rsqrt(bn_rvar.astype(jnp.float32) + jnp.float32(2e-5)))
    w_eff = (conv_w.astype(jnp.float32) * scale[:, None]).T            # (c, k)
    b_eff = (bn_beta.astype(jnp.float32) -
             bn_rmean.astype(jnp.float32) * scale).reshape(1, k)

    # Keep x in the caller's dtype (bf16 stays bf16 -> half the HBM read);
    # the kernel upcasts per tile so all math / accumulation is f32.
    x_flat = x_nchw.reshape(b, c, hw)
    itemsize = x_flat.dtype.itemsize

    # ---- per-generation VMEM budget --------------------------------------
    try:
        vmem_cap = int(pltpu.get_tpu_info().vmem_capacity_bytes)
    except Exception:                                  # conservative fallback
        vmem_cap = 64 << 20                            # v7x-sized
    vmem_limit = max(32 << 20, min(vmem_cap * 3 // 4, 96 << 20))
    x_budget = int(vmem_limit * 0.45)                  # double-buffered x window

    # ---- batch tiling (no host pad; partial tail block rows are undefined
    #      but only land in output rows that Pallas write-masks) -------------
    if b_tile is None:
        if b <= 8:
            b_tile = b
        else:
            # multiple of 8 (layout rule) and >= 2 blocks so v7x's second
            # TensorCore gets work via the "parallel" batch axis.
            b_tile = max(8, min(64, _round_down(b // 2, 8)))
    n_b = pl.cdiv(b, b_tile)

    cost = pl.CostEstimate(
        flops=3 * b * c * hw + 2 * b * c * k,
        transcendentals=0,
        bytes_accessed=b * c * hw * itemsize + 4 * (c * k + k + b * k))

    row_bytes = c * hw * itemsize                      # one batch row, full hw
    # single pass needs: 2 double-buffered x blocks + f32 working copies.
    single_pass_bytes = 2 * b_tile * row_bytes + 2 * b_tile * c * hw * 4
    single_pass = (hw_tile is None) and (single_pass_bytes <= int(vmem_limit * 0.7))

    if single_pass:
        kernel = functools.partial(_single_pass_kernel, hw_true=hw)
        return pl.pallas_call(
            kernel,
            out_shape=jax.ShapeDtypeStruct((b, k), jnp.float32),
            grid_spec=pltpu.PrefetchScalarGridSpec(
                num_scalar_prefetch=0,
                grid=(n_b,),
                in_specs=[
                    pl.BlockSpec((b_tile, c, hw), lambda i: (i, 0, 0)),
                    pl.BlockSpec((c, k), lambda i: (0, 0)),
                    pl.BlockSpec((1, k), lambda i: (0, 0)),
                ],
                out_specs=pl.BlockSpec((b_tile, k), lambda i: (i, 0)),
            ),
            compiler_params=pltpu.CompilerParams(
                dimension_semantics=("parallel",),
                vmem_limit_bytes=vmem_limit),
            cost_estimate=cost,
        )(x_flat, w_eff, b_eff)

    # ---- streaming path: hw tiled in lane-aligned chunks, tail masked ------
    if hw_tile is None:
        hw_tile = _round_down(x_budget // (2 * b_tile * c * itemsize), _LANE)
        hw_tile = max(_LANE, min(hw_tile, 64 * _LANE))
    if hw_tile % _LANE != 0:
        raise ValueError("hw_tile must be a multiple of 128")
    n_hw = pl.cdiv(hw, hw_tile)
    n_chunks = hw_tile // _LANE
    unroll = True if n_chunks <= 8 else 8

    kernel = functools.partial(_streaming_kernel, hw_true=hw, hw_tile=hw_tile,
                               n_chunks=n_chunks, unroll=unroll)
    return pl.pallas_call(
        kernel,
        out_shape=jax.ShapeDtypeStruct((b, k), jnp.float32),
        grid_spec=pltpu.PrefetchScalarGridSpec(
            num_scalar_prefetch=0,
            grid=(n_b, n_hw),                          # reduction (hw) axis last
            in_specs=[
                pl.BlockSpec((b_tile, c, hw_tile), lambda i, j: (i, 0, j)),
                pl.BlockSpec((c, k), lambda i, j: (0, 0)),
                pl.BlockSpec((1, k), lambda i, j: (0, 0)),
            ],
            out_specs=pl.BlockSpec((b_tile, k), lambda i, j: (i, 0)),
            scratch_shapes=[pltpu.VMEM((b_tile, c, _LANE), jnp.float32),
                            pltpu.VMEM((b_tile, c, _LANE), jnp.float32)],
        ),
        compiler_params=pltpu.CompilerParams(
            dimension_semantics=("parallel", "arbitrary"),
            vmem_limit_bytes=vmem_limit),
        cost_estimate=cost,
    )(x_flat, w_eff, b_eff)


def attention_weights_ref(x, conv_w, g, bt, rm, rv):
    """Pure-JAX reference (mirrors the PyTorch forward, eval-mode BN)."""
    mean = jnp.mean(x, axis=(2, 3))
    var = jnp.var(x, axis=(2, 3), ddof=1)
    y = mean * lax.rsqrt(var + 1e-3)
    z = y @ conv_w.T
    z = (z - rm) * lax.rsqrt(rv + 2e-5) * g + bt
    return jnp.clip(z + 3.0, 0.0, 6.0) / 6.0


if __name__ == "__main__":
    key = jax.random.PRNGKey(0)
    kx, kw, kg, kb, km, kv, kx2 = jax.random.split(key, 7)

    # ---- case 1: small feature map -> single-pass path --------------------
    B, C, H, W, K = 2, 16, 16, 16, 8
    x = jax.random.normal(kx, (B, C, H, W), dtype=jnp.float32)
    conv_w = jax.random.normal(kw, (K, C), dtype=jnp.float32) * 0.1   # Conv2d(C,K,1,bias=False)
    bn_gamma = 1.0 + 0.1 * jax.random.normal(kg, (K,), dtype=jnp.float32)
    bn_beta = 0.1 * jax.random.normal(kb, (K,), dtype=jnp.float32)
    bn_rmean = 0.1 * jax.random.normal(km, (K,), dtype=jnp.float32)
    bn_rvar = jnp.abs(1.0 + 0.1 * jax.random.normal(kv, (K,), dtype=jnp.float32))

    out = jax.block_until_ready(
        attention_weights(x, conv_w, bn_gamma, bn_beta, bn_rmean, bn_rvar))
    ref = attention_weights_ref(x, conv_w, bn_gamma, bn_beta, bn_rmean, bn_rvar)
    assert out.shape == (B, K)
    assert jnp.allclose(out, ref, atol=1e-4, rtol=1e-4), (out, ref)

    # ---- case 2: ragged hw (14x14 = 196, not a multiple of 128) with a
    # forced small hw_tile to exercise the streaming + masked-tail path ------
    B2, H2, W2 = 4, 14, 14
    x2 = jax.random.normal(kx2, (B2, C, H2, W2), dtype=jnp.float32)
    out2 = jax.block_until_ready(
        attention_weights(x2, conv_w, bn_gamma, bn_beta, bn_rmean, bn_rvar,
                          hw_tile=128))
    ref2 = attention_weights_ref(x2, conv_w, bn_gamma, bn_beta, bn_rmean, bn_rvar)
    assert out2.shape == (B2, K)
    assert jnp.allclose(out2, ref2, atol=1e-4, rtol=1e-4), (out2, ref2)

    print("KERNEL_OK")
</pallas_src>

<mosaic_0001>
module attributes {stable_mosaic.version = 11 : i64} {
  func.func @_single_pass_kernel(%arg0: i32, %arg1: memref<2x16x256xf32, #tpu.memory_space<vmem>>, %arg2: memref<16x8xf32, #tpu.memory_space<vmem>>, %arg3: memref<1x8xf32, #tpu.memory_space<vmem>>, %arg4: memref<2x8xf32, #tpu.memory_space<vmem>>) attributes {dimension_semantics = [#tpu.dimension_semantics<parallel>], iteration_bounds = array<i64: 1>, scalar_prefetch = 0 : i64, scratch_operands = 0 : i64, tpu.core_type = #tpu.core_type<tc>, window_params = [{transform_indices = @transform_0, window_bounds = array<i64: 2, 16, 256>}, {pipeline_mode = #tpu.pipeline_mode<synchronous>, transform_indices = @transform_1, window_bounds = array<i64: 16, 8>}, {pipeline_mode = #tpu.pipeline_mode<synchronous>, transform_indices = @transform_2, window_bounds = array<i64: 1, 8>}, {transform_indices = @transform_3, window_bounds = array<i64: 2, 8>}]} {
    %c0 = arith.constant 0 : index
    %c0_0 = arith.constant 0 : index
    %c0_1 = arith.constant 0 : index
    %0 = vector.load %arg1[%c0, %c0_0, %c0_1] : memref<2x16x256xf32, #tpu.memory_space<vmem>>, vector<2x16x256xf32>
    %cst = arith.constant dense<0.000000e+00> : vector<2x16xf32>
    %1 = vector.multi_reduction <add>, %0, %cst [2] : vector<2x16x256xf32> to vector<2x16xf32>
    %2 = arith.mulf %0, %0 : vector<2x16x256xf32>
    %cst_2 = arith.constant dense<0.000000e+00> : vector<2x16xf32>
    %3 = vector.multi_reduction <add>, %2, %cst_2 [2] : vector<2x16x256xf32> to vector<2x16xf32>
    %cst_3 = arith.constant 2.560000e+02 : f32
    %4 = vector.broadcast %cst_3 : f32 to vector<2x16xf32>
    %5 = arith.divf %1, %4 : vector<2x16xf32>
    %6 = arith.mulf %1, %5 : vector<2x16xf32>
    %7 = arith.subf %3, %6 : vector<2x16xf32>
    %cst_4 = arith.constant 2.560000e+02 : f32
    %cst_5 = arith.constant 1.000000e+00 : f32
    %8 = arith.subf %cst_4, %cst_5 : f32
    %9 = vector.broadcast %8 : f32 to vector<2x16xf32>
    %10 = arith.divf %7, %9 : vector<2x16xf32>
    %cst_6 = arith.constant 1.000000e-03 : f32
    %11 = vector.broadcast %cst_6 : f32 to vector<2x16xf32>
    %12 = arith.addf %10, %11 : vector<2x16xf32>
    %13 = math.rsqrt %12 : vector<2x16xf32>
    %14 = arith.mulf %5, %13 : vector<2x16xf32>
    %c0_7 = arith.constant 0 : index
    %c0_8 = arith.constant 0 : index
    %15 = vector.load %arg2[%c0_7, %c0_8] : memref<16x8xf32, #tpu.memory_space<vmem>>, vector<16x8xf32>
    %cst_9 = arith.constant dense<0.000000e+00> : vector<2x8xf32>
    %16 = tpu.matmul %14, %15, %cst_9 {dimension_numbers = #tpu.dot_dimension_numbers<[1], [0], [0], [1], [0, 0, 1, 1], [], []>} : vector<2x16xf32>, vector<16x8xf32>, vector<2x8xf32> -> vector<2x8xf32>
    %c0_10 = arith.constant 0 : index
    %c0_11 = arith.constant 0 : index
    %17 = vector.load %arg3[%c0_10, %c0_11] : memref<1x8xf32, #tpu.memory_space<vmem>>, vector<1x8xf32>
    %18 = vector.broadcast %17 : vector<1x8xf32> to vector<2x8xf32>
    %19 = arith.addf %16, %18 : vector<2x8xf32>
    %cst_12 = arith.constant 3.000000e+00 : f32
    %20 = vector.broadcast %cst_12 : f32 to vector<2x8xf32>
    %21 = arith.addf %19, %20 : vector<2x8xf32>
    %cst_13 = arith.constant 0.000000e+00 : f32
    %cst_14 = arith.constant 6.000000e+00 : f32
    %22 = vector.broadcast %cst_13 : f32 to vector<2x8xf32>
    %23 = arith.maximumf %22, %21 : vector<2x8xf32>
    %24 = vector.broadcast %cst_14 : f32 to vector<2x8xf32>
    %25 = arith.minimumf %24, %23 : vector<2x8xf32>
    %cst_15 = arith.constant 0.166666672 : f32
    %26 = vector.broadcast %cst_15 : f32 to vector<2x8xf32>
    %27 = arith.mulf %25, %26 : vector<2x8xf32>
    %c0_16 = arith.constant 0 : index
    %c0_17 = arith.constant 0 : index
    %28 = vector.load %arg4[%c0_16, %c0_17] : memref<2x8xf32, #tpu.memory_space<vmem>>, vector<2x8xf32>
    tpu.vector_store %arg4[%c0_16, %c0_17], %27 {strides = array<i32>} : memref<2x8xf32, #tpu.memory_space<vmem>>, vector<2x8xf32>,
    return
  }
  func.func @transform_0(%arg0: i32) -> (i32, i32, i32) {
    %c0_i32 = arith.constant 0 : i32
    %c0_i32_0 = arith.constant 0 : i32
    %c0_i32_1 = arith.constant 0 : i32
    return %arg0, %c0_i32, %c0_i32_0 : i32, i32, i32
  }
  func.func @transform_1(%arg0: i32) -> (i32, i32) {
    %c0_i32 = arith.constant 0 : i32
    %c0_i32_0 = arith.constant 0 : i32
    %c0_i32_1 = arith.constant 0 : i32
    return %c0_i32, %c0_i32_0 : i32, i32
  }
  func.func @transform_2(%arg0: i32) -> (i32, i32) {
    %c0_i32 = arith.constant 0 : i32
    %c0_i32_0 = arith.constant 0 : i32
    %c0_i32_1 = arith.constant 0 : i32
    return %c0_i32, %c0_i32_0 : i32, i32
  }
  func.func @transform_3(%arg0: i32) -> (i32, i32) {
    %c0_i32 = arith.constant 0 : i32
    %c0_i32_0 = arith.constant 0 : i32
    return %arg0, %c0_i32 : i32, i32
  }
}

</mosaic_0001>

<bundles_post_ra>
// kernel: tpu_custom_call.1
= control target key start
LH: loop header
LB: loop body
LE: loop exit
PB: predicated region body
PF: predicated region fallthrough
CT: control target
= control target key end

     0   :  { %8 = vsyncpa [#allocation3], 0  ;;  %s368_s0 = inlined_call_operand.hbm [shape: f32[2,16,256], index: 0, kind: input, shape index: {}]   ;;  %s369_s1 = inlined_call_operand.vmem [shape: f32[16,8], index: 1, kind: input, shape index: {}]   ;;  %s370_s2 = inlined_call_operand.vmem [shape: f32[1,8], index: 2, kind: input, shape index: {}]   ;;  %s371_s3 = inlined_call_operand.hbm [shape: f32[2,8], index: 3, kind: output, shape index: {}]  }
   0x1   :  { %9 = vsyncpa [#allocation4], 0  ;;  %s308_s12 = smov [#allocation2]   ;;  %s260_s16 = scalar_lea.hbm %s368_s0, 1024 }
   0x2   :  { %s15_s13 = sshll.u32 %s308_s12, 4  ;;  %p261_p0 = scmp.ne.s32.totalorder %s368_s0, %s260_s16  ;;  %s16_s13 = int_to_ptr.vmem [resolvable:$true] %s15_s13 }
   0x3   :  { %p264_p1 = scmp.lt.u32.totalorder %s260_s16, %s368_s0 }
   0x5   :  { %p266_p2 = pnand %p264_p1, %p261_p0 }
   0x7   :  { %269 = shalt.err (!%p266_p2)
}
   0x8   :  { %s270_s21 = scalar_lea.vmem %s16_s13, 1024  ;;  %p275_p4 = scmp.lt.s32.totalorder %s16_s13, %s16_s13 }
   0x9   :  { %p271_p3 = scmp.ne.s32.totalorder %s16_s13, %s270_s21  ;;  %p276_p5 = scmp.lt.s32.totalorder %s270_s21, %s270_s21 }
   0xb   :  { %p277_p6 = por %p276_p5, %p275_p4 }
   0xd   :  { %p278_p7 = pnand %p277_p6, %p271_p3 }
   0xf   :  { %281 = shalt.err (!%p278_p7)
}
  0x10   :  { %s309_s22 = smov 256   ;;  %s310_s23 = smov 16  }
  0x11   :  { %21 = dma.hbm_to_vmem [thread:$0]  %s368_s0, 1024, %s16_s13, [#allocation3], %s309_s22, %s309_s22, %s310_s23  }
  0x12   :  { %304 = dma.done.wait [#allocation3], 1024  }
  0x13   :  { %305 = vsyncadd [#allocation3], 4294966272  ;;  %v33_v0 = vld [vmem:[#allocation2 + $0x20] sm:$0xff]  ;;  %v34_v1 = vld [vmem:[#allocation2 + $0x28] sm:$0xff]  ;;  %v311_v26 = vmov 0.0|0.0   ;;  %vm312_vm0 = vmmov 0   ;;  %v112_v54 = vlaneseq }
  0x14   :  { %v29_v2 = vld [vmem:[#allocation2] sm:$0xff]  ;;  %v43_v3 = vadd.f32 %v34_v1, %v33_v0  ;;  %v30_v4 = vld [vmem:[#allocation2 + $0x8] sm:$0xff]  ;;  %v35_v5 = vld [vmem:[#allocation2 + $0x30] sm:$0xff]  ;;  %v53_v19 = vmul.f32 %v33_v0, %v33_v0  ;;  %v54_v20 = vmul.f32 %v34_v1, %v34_v1  ;;  %242 = vmatprep.subr.bf16.mxu0 %v311_v26  ;;  %v313_v28 = vmov 0.0   ;;  %s314_s30 = smov [#allocation5]  }
  0x15   :  { %v36_v6 = vld [vmem:[#allocation2 + $0x38] sm:$0xff]  ;;  %v37_v7 = vadd.f32 %v30_v4, %v29_v2  ;;  %v31_v8 = vld [vmem:[#allocation2 + $0x10] sm:$0xff]  ;;  %v49_v13 = vmul.f32 %v29_v2, %v29_v2  ;;  %v50_v14 = vmul.f32 %v30_v4, %v30_v4  ;;  %v55_v17 = vmul.f32 %v35_v5, %v35_v5  ;;  %v99_v24 = vld [vmem:[%s369_s1] sm:$0xff]  ;;  %239 = vmatprep.mubr.msk.f32.mxu0 %vm312_vm0, %v313_v28  ;;  %s221_s4 = sshll.u32 %s314_s30, 4  ;;  %s222_s4 = int_to_ptr.vmem [resolvable:$true] %s221_s4 }
  0x16   :  { %v32_v9 = vld [vmem:[#allocation2 + $0x18] sm:$0xff]  ;;  %44 = vadd.xlane.f32.xlu1 %v43_v3  ;;  %v46_v10 = vadd.f32 %v36_v6, %v35_v5  ;;  %v51_v11 = vmul.f32 %v31_v8, %v31_v8  ;;  %v56_v18 = vmul.f32 %v36_v6, %v36_v6  ;;  %v63_v23 = vadd.f32 %v54_v20, %v53_v19  ;;  %v100_v25 = vld [vmem:[%s369_s1 + $0x8] sm:$0xff]  ;;  %s282_s5 = scalar_lea.vmem %s222_s4, 32  ;;  %p287_p9 = scmp.lt.s32.totalorder %s222_s4, %s222_s4 }
  0x17   :  { %v52_v12 = vmul.f32 %v32_v9, %v32_v9  ;;  %38 = vadd.xlane.f32.xlu0 %v37_v7  ;;  %v40_v15 = vadd.f32 %v32_v9, %v31_v8  ;;  %v57_v21 = vadd.f32 %v50_v14, %v49_v13  ;;  %v243_v27 = vpack.c.bf16 %v100_v25, %v99_v24  ;;  %v230_v14 = vld [vmem:[%s370_s2] ss:$0 sm:$0xff]  ;;  %p283_p8 = scmp.ne.s32.totalorder %s222_s4, %s282_s5  ;;  %p288_p10 = scmp.lt.s32.totalorder %s282_s5, %s282_s5 }
  0x18   :  { %v66_v22 = vadd.f32 %v56_v18, %v55_v17  ;;  %v113_v58 = vand.u32 127, %v112_v54  ;;  %v115_v59 = vshrl.u32 %v112_v54, 7  ;;  %vm123_vm1 = vcmask 130112  }
  0x19   :  { %v60_v16 = vadd.f32 %v52_v12, %v51_v11  ;;  %244 = vmatpush3.bf16.msra.mxu0 %v243_v27  ;;  %vm134_vm2 = vcmask 1041409   ;;  %vm136_vm3 = vcmask 130048   ;;  %vm213_vm4 = vcmask 58368   ;;  %p289_p11 = por %p288_p10, %p287_p9 }
  0x1a   :  { %47 = vadd.xlane.f32.xlu1 %v46_v10  ;;  %v118_v60 = vadd.s32 4294967288, %v113_v58  ;;  %v116_v0 = vsub.s32 %v113_v58, %v115_v59 }
  0x1b   :  { %41 = vadd.xlane.f32.xlu0 %v40_v15  ;;  %p290_p12 = pnand %p289_p11, %p283_p8 }
  0x1c   :  { %v121_v1 = vsub.s32 %v118_v60, %v115_v59 }
  0x1e   :  { %61 = vadd.xlane.f32.xlu1 %v60_v16 }
  0x1f   :  { %58 = vadd.xlane.f32.xlu0 %v57_v21 }
  0x22   :  { %67 = vadd.xlane.f32.xlu1 %v66_v22 }
  0x23   :  { %64 = vadd.xlane.f32.xlu0 %v63_v23 }
  0xa3   :  { %v45_v29 = vpop.xlane.xlu1 %44 }
  0xa4   :  { %v39_v30 = vpop.xlane.xlu0 %38  ;;  %v72_v36 = vmul.f32 0.00390625, %v45_v29 }
  0xa5   :  { %v70_v31 = vmul.f32 0.00390625, %v39_v30 }
  0xa6   :  { %v76_v44 = vmul.f32 %v72_v36, %v45_v29 }
  0xa7   :  { %v48_v32 = vpop.xlane.xlu1 %47  ;;  %v74_v37 = vmul.f32 %v70_v31, %v39_v30 }
  0xa8   :  { %v42_v33 = vpop.xlane.xlu0 %41  ;;  %v73_v35 = vmul.f32 0.00390625, %v48_v32 }
  0xa9   :  { %v71_v34 = vmul.f32 0.00390625, %v42_v33 }
  0xaa   :  { %v77_v43 = vmul.f32 %v73_v35, %v48_v32 }
  0xab   :  { %v75_v38 = vmul.f32 %v71_v34, %v42_v33  ;;  %v62_v39 = vpop.xlane.xlu1 %61 }
  0xac   :  { %v59_v40 = vpop.xlane.xlu0 %58 }
  0xad   :  { %v79_v41 = vsub.f32 %v62_v39, %v75_v38  ;;  %v78_v42 = vsub.f32 %v59_v40, %v74_v37 }
  0xaf   :  { %v84_v45 = vmul.f32 0.003921569, %v79_v41  ;;  %v83_v46 = vmul.f32 0.003921569, %v78_v42  ;;  %v68_v47 = vpop.xlane.xlu1 %67 }
  0xb0   :  { %v81_v48 = vsub.f32 %v68_v47, %v77_v43  ;;  %v65_v49 = vpop.xlane.xlu0 %64 }
  0xb1   :  { %v88_v50 = vadd.f32 0.001, %v84_v45  ;;  %v87_v51 = vadd.f32 0.001, %v83_v46  ;;  %v80_v52 = vsub.f32 %v65_v49, %v76_v44 }
  0xb2   :  { %v86_v53 = vmul.f32 0.003921569, %v81_v48 }
  0xb3   :  { %252 = vrsqrt.f32 %v88_v50  ;;  %v85_v55 = vmul.f32 0.003921569, %v80_v52 }
  0xb4   :  { %254 = vrsqrt.f32 %v87_v51  ;;  %v90_v56 = vadd.f32 0.001, %v86_v53 }
  0xb5   :  { %v89_v57 = vadd.f32 0.001, %v85_v55 }
  0xb6   :  { %256 = vrsqrt.f32 %v90_v56 }
  0xb7   :  { %258 = vrsqrt.f32 %v89_v57 }
  0xbd   :  { %v253_v61 = vpop.eup %252 }
  0xbe   :  { %v255_v62 = vpop.eup %254  ;;  %v96_v63 = vmul.f32 %v253_v61, %v71_v34 }
  0xbf   :  { %v95_v2 = vmul.f32 %v255_v62, %v70_v31 }
  0xc0   :  { %v257_v3 = vpop.eup %256  ;;  %v122_v8 = vrot.slane %v96_v63, %v121_v1 }
  0xc1   :  { %v259_v4 = vpop.eup %258  ;;  %v98_v5 = vmul.f32 %v257_v3, %v73_v35  ;;  %v117_v7 = vrot.slane %v95_v2, %v116_v0 }
  0xc2   :  { %v97_v6 = vmul.f32 %v259_v4, %v72_v36 }
  0xc3   :  { %v132_v9 = vrot.slane %v98_v5, %v121_v1  ;;  %v124_v11 = vsel %vm123_vm1, %v122_v8, %v117_v7 }
  0xc4   :  { %v128_v10 = vrot.slane %v97_v6, %v116_v0 }
  0xc6   :  { %v133_v12 = vsel %vm123_vm1, %v132_v9, %v128_v10 }
  0xc7   :  { %v135_v13 = vsel %vm134_vm2, %v133_v12, %v124_v11 }
  0xc8   :  { %240 = vmatmul.mubr.msk.f32.vlgmr.msra.gmra.mrb[0].mxu0 %vm136_vm3, %v135_v13 }
 0x19b   :  { %v205_v15 = vpop.f32.mrb[0].mxu0 }
 0x19c   :  { %v206_v16 = vadd.f32 %v230_v14, %v205_v15  ;;  %v241_v17 = vpop.f32.mrb[1].mxu0 }
 0x19e   :  { %v209_v18 = vadd.f32 3.0, %v206_v16 }
 0x1a0   :  { %v210_v19 = vmax.f32 %v209_v18, 0.0 }
 0x1a2   :  { %v211_v20 = vmin.f32 %v210_v19, 6.0 }
 0x1a4   :  { %v212_v21 = vmul.f32 0.16666667, %v211_v20 }
 0x1a6   :  { %214 = vst.msk [vmem:[#allocation5] sm:$0x3] %vm213_vm4, %v212_v21 }
 0x1a7   :  { %293 = shalt.err (!%p290_p12)
}
 0x1a8   :  { %s294_s7 = scalar_lea.hbm %s371_s3, 32 }
 0x1a9   :  { %p295_p13 = scmp.ne.s32.totalorder %s371_s3, %s294_s7  ;;  %p298_p0 = scmp.lt.u32.totalorder %s294_s7, %s371_s3 }
 0x1ab   :  { %p300_p1 = pnand %p298_p0, %p295_p13 }
 0x1ad   :  { %303 = shalt.err (!%p300_p1)
}
 0x1ae   :  { %224 = dma.vmem_to_hbm [thread:$0]  %s222_s4, 32, %s371_s3, [#allocation4]  }
 0x1af   :  { %306 = dma.done.wait [#allocation4], 32  }
 0x1b0   :  { %307 = vsyncadd [#allocation4], 4294967264 }
 0x1b1   :  { %228 = vsyncpa [#allocation3], 1 }
 0x1b2   :  { %229 = vsyncpa [#allocation4], 1 }

</bundles_post_ra>
